<compile_context>
chip_gen: v6e
topology: v6e:2x2x1
jax: 0.10.0
libtpu: 0.0.40
codegen_flags: <defaults>
</compile_context>

<pallas_src>
import functools

import jax
import jax.numpy as jnp
from jax.experimental import pallas as pl
from jax.experimental.pallas import tpu as pltpu

HIDDEN = 768   # bert-base hidden size (fixed by nn.Linear(768, 256))
MLP = 256      # classifier intermediate size
OUT = 1        # classifier output size


def _round_up(x, m):
    return (x + m - 1) // m * m


def _choose_tiles(batch, seq_len, target_rows=1024):
    """Pick (BT, ts, S_pad).

    * S is padded to a multiple of 16 (bf16 sublane packing); ts is the largest
      candidate tile (<= 512) dividing the padded length.
    * BT grows until BT*ts ~ target_rows (~1-3 MiB of f32 hidden per grid step,
      MXU M >= 256 for realistic BERT shapes) while keeping >= 2 steps on the
      "parallel" batch axis so both v7x TensorCores stay fed.
    """
    s_pad = _round_up(seq_len, 16)
    ts = 16
    for cand in (512, 256, 128, 64, 32, 16):
        if s_pad % cand == 0:
            ts = cand
            break
    bt = 1
    for cand in range(1, batch + 1):
        if batch % cand:
            continue
        if cand * ts <= target_rows and (batch == 1 or batch // cand >= 2):
            bt = cand
    return bt, ts, s_pad


def classifier_mean_kernel(h_ref, w1_ref, b1_ref, w2s_ref, b2_ref, o_ref, acc_ref,
                           *, n_pad):
    """One (batch-tile, seq-tile) grid step.

    h_ref  : [BT, ts, 768]  f32 (or bf16) hidden block; cast to bf16 in-kernel
    w1_ref : [768, 256]     bf16 (resident in VMEM, constant index map)
    b1_ref : [1, 256]       f32
    w2s_ref: [1, 256]       f32   (w2.T / S — sequence mean folded into w2)
    b2_ref : [1, 1]         f32
    o_ref  : [BT, 1, 1]     f32
    acc_ref: [BT, 8, 256]   f32 VMEM scratch (sublane dim kept -> hot-loop reduce is VPU)
    """
    s = pl.program_id(1)
    bt, ts, h = h_ref.shape

    @pl.when(s == 0)
    def _init():
        acc_ref[...] = jnp.zeros_like(acc_ref)

    # bf16 feeds the MXU; accumulation / bias / ReLU stay in f32 (v5e VPU has no bf16).
    x = h_ref[...].astype(jnp.bfloat16).reshape(bt * ts, h)
    z1 = jnp.dot(x, w1_ref[...], preferred_element_type=jnp.float32)     # [BT*ts, 256]
    z1 = jnp.maximum(z1 + b1_ref[...], 0.0)
    # Partial sequence reduce that never crosses sublanes: plain vreg adds on the VPU.
    acc_ref[...] += z1.reshape(bt, ts // 8, 8, MLP).sum(axis=1)

    @pl.when(s == pl.num_programs(1) - 1)
    def _finalize():
        feat = acc_ref[...].sum(axis=1)                                  # [BT, 256] (one XLU reduce)
        if n_pad:
            # Zero-padded rows each contributed exactly relu(b1); remove them analytically.
            feat = feat - float(n_pad) * jnp.maximum(b1_ref[...], 0.0)
        scores = jnp.sum(feat * w2s_ref[...], axis=-1, keepdims=True) + b2_ref[...]
        o_ref[...] = scores.reshape(bt, 1, 1)


def bert_lm_classifier(hidden, w1, b1, w2, b2):
    """hidden: [B, S, 768] (f32 or bf16) -> [B, 1] f32 == torch.mean(classifier(h), axis=1).

    Parameter convention: w1 = torch_W1.T (768,256), w2 = torch_W2.T (256,1).
    """
    B, S, H = hidden.shape
    assert H == HIDDEN
    bt, ts, s_pad = _choose_tiles(B, S)
    n_pad = s_pad - S
    if n_pad:
        # TODO(synk): for long ragged sequences an in-kernel iota mask would avoid this pad
        # copy; for BERT-sized S (a multiple of 16, e.g. 128/256/384/512) it never fires.
        hidden = jnp.pad(hidden, ((0, 0), (0, n_pad), (0, 0)))

    # Weight-side layout/precision plumbing (done once, tiny): w1 -> bf16 for the MXU,
    # 1/S folded into w2. NOTE: `hidden` is NOT cast here — no bf16 HBM round-trip.
    w1_bf16 = w1.astype(jnp.bfloat16)
    b1_f32 = b1.reshape(1, MLP).astype(jnp.float32)
    w2s_f32 = (w2.reshape(MLP, OUT).T / float(S)).astype(jnp.float32)    # [1, 256]
    b2_f32 = b2.reshape(1, 1).astype(jnp.float32)

    kernel = functools.partial(classifier_mean_kernel, n_pad=n_pad)

    out = pl.pallas_call(
        kernel,
        out_shape=jax.ShapeDtypeStruct((B, 1, 1), jnp.float32),
        grid_spec=pltpu.PrefetchScalarGridSpec(
            num_scalar_prefetch=0,
            grid=(B // bt, s_pad // ts),
            in_specs=[
                # hidden: batch-tile x seq-tile x full hidden dim (lane-dense).
                pl.BlockSpec((bt, ts, H), lambda b, s: (b, s, 0)),
                # weights / biases: constant index maps -> resident in VMEM.
                pl.BlockSpec((H, MLP), lambda b, s: (0, 0)),
                pl.BlockSpec((1, MLP), lambda b, s: (0, 0)),
                pl.BlockSpec((1, MLP), lambda b, s: (0, 0)),
                pl.BlockSpec((1, 1), lambda b, s: (0, 0)),
            ],
            out_specs=pl.BlockSpec((bt, 1, 1), lambda b, s: (b, 0, 0)),
            scratch_shapes=[pltpu.VMEM((bt, 8, MLP), jnp.float32)],
        ),
        compiler_params=pltpu.CompilerParams(
            dimension_semantics=("parallel", "arbitrary"),
        ),
        cost_estimate=pl.CostEstimate(
            flops=2 * B * s_pad * HIDDEN * MLP,
            transcendentals=0,
            bytes_accessed=(hidden.size * hidden.dtype.itemsize
                            + HIDDEN * MLP * 2 + (2 * MLP + 1 + B) * 4),
        ),
    )(hidden, w1_bf16, b1_f32, w2s_f32, b2_f32)

    return out.reshape(B, 1)


def reference(hidden, w1, b1, w2, b2):
    z1 = jnp.maximum(hidden @ w1 + b1, 0.0)          # [B, S, 256]
    z2 = z1 @ w2 + b2                                 # [B, S, 1]
    return jnp.mean(z2, axis=1)                       # [B, 1]


if __name__ == "__main__":
    key = jax.random.PRNGKey(0)
    k_emb, k_ids, k_w1, k_b1, k_w2, k_b2 = jax.random.split(key, 6)

    VOCAB = 64  # small stand-in vocab

    # --- stand-in for the frozen BERT encoder (plain JAX glue producing the last hidden state) ---
    emb_table = jax.random.normal(k_emb, (VOCAB, HIDDEN), dtype=jnp.float32) * 0.02

    # --- classifier parameters (deterministic init, shapes from the module) ---
    w1 = jax.random.normal(k_w1, (HIDDEN, MLP), dtype=jnp.float32) / jnp.sqrt(float(HIDDEN))
    b1 = jax.random.normal(k_b1, (MLP,), dtype=jnp.float32) * 0.01
    w2 = jax.random.normal(k_w2, (MLP, OUT), dtype=jnp.float32) / jnp.sqrt(float(MLP))
    b2 = jax.random.normal(k_b2, (OUT,), dtype=jnp.float32) * 0.01

    # Two small cases: (4, 48) exercises batch tiling + multi-step sequence reduction;
    # (2, 40) additionally exercises sequence padding + the pad-row correction.
    for (B, S) in ((4, 48), (2, 40)):
        hypo_sample = jax.random.randint(k_ids, (B, S), 0, VOCAB, dtype=jnp.int32)
        sample_hidden_last = emb_table[hypo_sample]                   # [B, S, 768] f32

        out = bert_lm_classifier(sample_hidden_last, w1, b1, w2, b2)
        out = jax.block_until_ready(out)

        ref = reference(sample_hidden_last, w1, b1, w2, b2)
        assert out.shape == (B, 1), out.shape
        # bf16 MXU inputs (f32 accumulation) -> loosen tolerance vs the pure-f32 reference.
        assert jnp.allclose(out, ref, atol=5e-3, rtol=5e-2), (B, S, out, ref)

    print("KERNEL_OK")
</pallas_src>

<mosaic_0001>
module attributes {stable_mosaic.version = 11 : i64} {
  func.func @classifier_mean_kernel(%arg0: i32, %arg1: i32, %arg2: memref<2x16x768xf32, #tpu.memory_space<vmem>>, %arg3: memref<768x256xbf16, #tpu.memory_space<vmem>>, %arg4: memref<1x256xf32, #tpu.memory_space<vmem>>, %arg5: memref<1x256xf32, #tpu.memory_space<vmem>>, %arg6: memref<1x1xf32, #tpu.memory_space<vmem>>, %arg7: memref<2x1x1xf32, #tpu.memory_space<vmem>>, %arg8: memref<2x8x256xf32, #tpu.memory_space<vmem>>) attributes {dimension_semantics = [#tpu.dimension_semantics<parallel>, #tpu.dimension_semantics<arbitrary>], iteration_bounds = array<i64: 2, 3>, scalar_prefetch = 0 : i64, scratch_operands = 1 : i64, tpu.core_type = #tpu.core_type<tc>, window_params = [{transform_indices = @transform_0, window_bounds = array<i64: 2, 16, 768>}, {pipeline_mode = #tpu.pipeline_mode<synchronous>, transform_indices = @transform_1, window_bounds = array<i64: 768, 256>}, {pipeline_mode = #tpu.pipeline_mode<synchronous>, transform_indices = @transform_2, window_bounds = array<i64: 1, 256>}, {pipeline_mode = #tpu.pipeline_mode<synchronous>, transform_indices = @transform_3, window_bounds = array<i64: 1, 256>}, {pipeline_mode = #tpu.pipeline_mode<synchronous>, transform_indices = @transform_4, window_bounds = array<i64: 1, 1>}, {transform_indices = @transform_5, window_bounds = array<i64: 2, 1, 1>}]} {
    %c0_i32 = arith.constant 0 : i32
    %0 = arith.cmpi eq, %arg1, %c0_i32 : i32
    %1 = arith.extui %0 : i1 to i32
    %c0_i32_0 = arith.constant 0 : i32
    %2 = arith.cmpi ne, %1, %c0_i32_0 : i32
    scf.if %2 {
      %cst_16 = arith.constant 0.000000e+00 : f32
      %21 = vector.broadcast %cst_16 : f32 to vector<2x8x256xf32>
      %c0_17 = arith.constant 0 : index
      %c0_18 = arith.constant 0 : index
      %c0_19 = arith.constant 0 : index
      %22 = vector.load %arg8[%c0_17, %c0_18, %c0_19] : memref<2x8x256xf32, #tpu.memory_space<vmem>>, vector<2x8x256xf32>
      tpu.vector_store %arg8[%c0_17, %c0_18, %c0_19], %21 {strides = array<i32>} : memref<2x8x256xf32, #tpu.memory_space<vmem>>, vector<2x8x256xf32>,
    } else {
    }
    %c0 = arith.constant 0 : index
    %c0_1 = arith.constant 0 : index
    %c0_2 = arith.constant 0 : index
    %3 = vector.load %arg2[%c0, %c0_1, %c0_2] : memref<2x16x768xf32, #tpu.memory_space<vmem>>, vector<2x16x768xf32>
    %4 = arith.truncf %3 : vector<2x16x768xf32> to vector<2x16x768xbf16>
    %5 = vector.shape_cast %4 : vector<2x16x768xbf16> to vector<32x768xbf16>
    %c0_3 = arith.constant 0 : index
    %c0_4 = arith.constant 0 : index
    %6 = vector.load %arg3[%c0_3, %c0_4] : memref<768x256xbf16, #tpu.memory_space<vmem>>, vector<768x256xbf16>
    %cst = arith.constant dense<0.000000e+00> : vector<32x256xf32>
    %7 = tpu.matmul %5, %6, %cst {dimension_numbers = #tpu.dot_dimension_numbers<[1], [0], [0], [1], [0, 0, 1, 1], [], []>} : vector<32x768xbf16>, vector<768x256xbf16>, vector<32x256xf32> -> vector<32x256xf32>
    %c0_5 = arith.constant 0 : index
    %c0_6 = arith.constant 0 : index
    %8 = vector.load %arg4[%c0_5, %c0_6] : memref<1x256xf32, #tpu.memory_space<vmem>>, vector<1x256xf32>
    %9 = vector.broadcast %8 : vector<1x256xf32> to vector<32x256xf32>
    %10 = arith.addf %7, %9 : vector<32x256xf32>
    %cst_7 = arith.constant 0.000000e+00 : f32
    %11 = vector.broadcast %cst_7 : f32 to vector<32x256xf32>
    %12 = arith.maximumf %10, %11 : vector<32x256xf32>
    %c0_8 = arith.constant 0 : index
    %c0_9 = arith.constant 0 : index
    %c0_10 = arith.constant 0 : index
    %13 = vector.load %arg8[%c0_8, %c0_9, %c0_10] : memref<2x8x256xf32, #tpu.memory_space<vmem>>, vector<2x8x256xf32>
    %14 = vector.shape_cast %12 : vector<32x256xf32> to vector<2x2x8x256xf32>
    %cst_11 = arith.constant dense<0.000000e+00> : vector<2x8x256xf32>
    %15 = vector.multi_reduction <add>, %14, %cst_11 [1] : vector<2x2x8x256xf32> to vector<2x8x256xf32>
    %16 = arith.addf %13, %15 : vector<2x8x256xf32>
    %c0_12 = arith.constant 0 : index
    %c0_13 = arith.constant 0 : index
    %c0_14 = arith.constant 0 : index
    %17 = vector.load %arg8[%c0_12, %c0_13, %c0_14] : memref<2x8x256xf32, #tpu.memory_space<vmem>>, vector<2x8x256xf32>
    tpu.vector_store %arg8[%c0_12, %c0_13, %c0_14], %16 {strides = array<i32>} : memref<2x8x256xf32, #tpu.memory_space<vmem>>, vector<2x8x256xf32>,
    %c2_i32 = arith.constant 2 : i32
    %18 = arith.cmpi eq, %arg1, %c2_i32 : i32
    %19 = arith.extui %18 : i1 to i32
    %c0_i32_15 = arith.constant 0 : i32
    %20 = arith.cmpi ne, %19, %c0_i32_15 : i32
    scf.if %20 {
      %c0_16 = arith.constant 0 : index
      %c0_17 = arith.constant 0 : index
      %c0_18 = arith.constant 0 : index
      %21 = vector.load %arg8[%c0_16, %c0_17, %c0_18] : memref<2x8x256xf32, #tpu.memory_space<vmem>>, vector<2x8x256xf32>
      %cst_19 = arith.constant dense<0.000000e+00> : vector<2x256xf32>
      %22 = vector.multi_reduction <add>, %21, %cst_19 [1] : vector<2x8x256xf32> to vector<2x256xf32>
      %c0_20 = arith.constant 0 : index
      %c0_21 = arith.constant 0 : index
      %23 = vector.load %arg5[%c0_20, %c0_21] : memref<1x256xf32, #tpu.memory_space<vmem>>, vector<1x256xf32>
      %24 = vector.broadcast %23 : vector<1x256xf32> to vector<2x256xf32>
      %25 = arith.mulf %22, %24 : vector<2x256xf32>
      %cst_22 = arith.constant dense<0.000000e+00> : vector<2xf32>
      %26 = vector.multi_reduction <add>, %25, %cst_22 [1] : vector<2x256xf32> to vector<2xf32>
      %27 = vector.shape_cast %26 : vector<2xf32> to vector<2x1xf32>
      %c0_23 = arith.constant 0 : index
      %c0_24 = arith.constant 0 : index
      %28 = vector.load %arg6[%c0_23, %c0_24] : memref<1x1xf32, #tpu.memory_space<vmem>>, vector<1x1xf32>
      %29 = vector.broadcast %28 : vector<1x1xf32> to vector<2x1xf32>
      %30 = arith.addf %27, %29 : vector<2x1xf32>
      %31 = vector.shape_cast %30 : vector<2x1xf32> to vector<2x1x1xf32>
      %c0_25 = arith.constant 0 : index
      %c0_26 = arith.constant 0 : index
      %c0_27 = arith.constant 0 : index
      %32 = vector.load %arg7[%c0_25, %c0_26, %c0_27] : memref<2x1x1xf32, #tpu.memory_space<vmem>>, vector<2x1x1xf32>
      tpu.vector_store %arg7[%c0_25, %c0_26, %c0_27], %31 {strides = array<i32>} : memref<2x1x1xf32, #tpu.memory_space<vmem>>, vector<2x1x1xf32>,
    } else {
    }
    return
  }
  func.func @transform_0(%arg0: i32, %arg1: i32) -> (i32, i32, i32) {
    %c0_i32 = arith.constant 0 : i32
    %c0_i32_0 = arith.constant 0 : i32
    return %arg0, %arg1, %c0_i32 : i32, i32, i32
  }
  func.func @transform_1(%arg0: i32, %arg1: i32) -> (i32, i32) {
    %c0_i32 = arith.constant 0 : i32
    %c0_i32_0 = arith.constant 0 : i32
    %c0_i32_1 = arith.constant 0 : i32
    return %c0_i32, %c0_i32_0 : i32, i32
  }
  func.func @transform_2(%arg0: i32, %arg1: i32) -> (i32, i32) {
    %c0_i32 = arith.constant 0 : i32
    %c0_i32_0 = arith.constant 0 : i32
    %c0_i32_1 = arith.constant 0 : i32
    return %c0_i32, %c0_i32_0 : i32, i32
  }
  func.func @transform_3(%arg0: i32, %arg1: i32) -> (i32, i32) {
    %c0_i32 = arith.constant 0 : i32
    %c0_i32_0 = arith.constant 0 : i32
    %c0_i32_1 = arith.constant 0 : i32
    return %c0_i32, %c0_i32_0 : i32, i32
  }
  func.func @transform_4(%arg0: i32, %arg1: i32) -> (i32, i32) {
    %c0_i32 = arith.constant 0 : i32
    %c0_i32_0 = arith.constant 0 : i32
    %c0_i32_1 = arith.constant 0 : i32
    return %c0_i32, %c0_i32_0 : i32, i32
  }
  func.func @transform_5(%arg0: i32, %arg1: i32) -> (i32, i32, i32) {
    %c0_i32 = arith.constant 0 : i32
    %c0_i32_0 = arith.constant 0 : i32
    %c0_i32_1 = arith.constant 0 : i32
    return %arg0, %c0_i32, %c0_i32_0 : i32, i32, i32
  }
}

</mosaic_0001>

<bundles_post_ra>
// kernel: tpu_custom_call.1
= control target key start
LH: loop header
LB: loop body
LE: loop exit
PB: predicated region body
PF: predicated region fallthrough
CT: control target
= control target key end

     0   :  { %s2038_s0 = inlined_call_operand.hbm [shape: f32[4,48,768], index: 0, kind: input, shape index: {}]   ;;  %s2039_s1 = inlined_call_operand.hbm [shape: bf16[768,256], index: 1, kind: input, shape index: {}]   ;;  %s2040_s2 = inlined_call_operand.vmem [shape: f32[1,256], index: 2, kind: input, shape index: {}]   ;;  %s2041_s3 = inlined_call_operand.vmem [shape: f32[1,256], index: 3, kind: input, shape index: {}]   ;;  %s2042_s4 = inlined_call_operand.<no memory space> [shape: f32[1,1], index: 4, kind: input, shape index: {}]   ;;  %s2043_s5 = inlined_call_operand.vmem [shape: f32[4,1,1], index: 5, kind: output, shape index: {}]  }
   0x1   :  { %2047 = sst [smem:[#allocation15_spill]] %s2039_s1  ;;  %v10_v0 = vstv %s2042_s4 }
   0x2   :  { %11 = vst [vmem:[#allocation3] sm:$0x1] %v10_v0 }
   0x3   :  { %12 = vsyncpa [#allocation5], 0 }
   0x4   :  { %14 = vsyncpa [#allocation5 + $0x1], 0 }
   0x5   :  { %15 = vsyncpa [#allocation7], 0  ;;  %s1840_s20 = smov 0   ;;  %s1842_s21 = smov 0  }
   0x6   :  { %s1844_s22 = smov 0   ;;  %s1846_s23 = smov 0  }
   0x7   :  { %s1848_s24 = smov 0   ;;  %s1850_s25 = smov 0  }
   0x8   :  { %s1852_s26 = smov 0   ;;  %s1854_s27 = smov 0  }
   0x9 LB: > { %s1308_s4 = sadd.s32 4294967295, %s1794_s27   ;;  %s30_s28 = sadd.s32 1, %s1786_s25  ;;  %s1794_s27 = sphi %s1854_s27, %s21_s27   ;;  %s1790_s26 = sphi %s1852_s26, %s2064_s26   ;;  %s1786_s25 = sphi %s1850_s25, %s2063_s25   ;;  %s1782_s24 = sphi %s1848_s24, %s2062_s24   ;;  %s1778_s23 = sphi %s1846_s23, %s2061_s23   ;;  %s1774_s22 = sphi %s1844_s22, %s2060_s22   ;;  %s1770_s21 = sphi %s1842_s21, %s2059_s21   ;;  %s1766_s20 = sphi %s1840_s20, %s2058_s20  }
   0xa   : > { %p31_p0 = scmp.ge.s32.totalorder %s30_s28, 3  ;;  %s33_s29 = sadd.s32 1, %s1790_s26 }
   0xb   : > { %s42_s30 = sadd.s32 1, %s1774_s22  ;;  %p49_p1 = scmp.ne.s32.totalorder %s1774_s22, %s1770_s21 }
   0xc   : > { %s2066_s28 = smov (%p31_p0, %s30_s28), 0  ;;  %s2068_s29 = smov (!%p31_p0, %s33_s29), %s1790_s26 }
   0xd   : > { %2048 = sst [smem:[#allocation13_spill]] %s2066_s28  ;;  %s38_s6 = ssub.s32 %s1786_s25, %s2066_s28 }
   0xe   : > { %p50_p2 = scmp.eq.s32.totalorder %s1794_s27, 0  ;;  %p35_p3 = scmp.ge.s32.totalorder %s2068_s29, 2 }
   0xf   : > { %p55_p4 = scmp.ne.s32.totalorder %s1770_s21, %s1766_s20  ;;  %p1895_p6 = scmp.eq.s32.totalorder %s1308_s4, 0 }
  0x10   : > { %p1891_p5 = por %p50_p2, %p49_p1  ;;  %s2070_s29 = smov (%p35_p3, %s2068_s29), 0 }
  0x11   : > { %2051 = sst [smem:[#allocation14_spill]] %s2070_s29  ;;  %p1903_p7 = por %p1895_p6, %p55_p4 }
  0x12   : > { %p1310_p8 = scmp.ge.s32.totalorder %s1794_s27, 1  ;;  %s37_s10 = ssub.s32 %s1790_s26, %s2070_s29 }
  0x13   : > { %s2052_s9 = scalar_select %p1903_p7, 1, 0 }
  0x14   : > { %p176_p9 = scmp.lt.s32.totalorder %s1794_s27, 7  ;;  %s39_s11 = sor.u32 %s38_s6, %s37_s10 }
  0x15   : > { %p40_p10 = scmp.eq.s32.totalorder %s39_s11, 0  ;;  %s1796_s14 = smov [#allocation6]  }
  0x16   : > { %p1911_p11 = pnand %p1310_p8, %p176_p9  ;;  %s188_s15 = sshll.u32 %s1796_s14, 4  ;;  %s189_s15 = int_to_ptr.vmem [resolvable:$true] %s188_s15 }
  0x17   : > { %s1916_s13 = scalar_select %p40_p10, %s1774_s22, %s42_s30  }
  0x18   : > { %p1473_p12 = pneg %p1911_p11  ;;  %s1709_s16 = scalar_lea.vmem %s189_s15, 12288 }
  0x19   : > { %p1710_p1 = scmp.ne.s32.totalorder %s189_s15, %s1709_s16  ;;  %p1717_p4 = scmp.lt.s32.totalorder %s189_s15, %s189_s15 }
  0x1a   : > { %p1474_p13 = pnand %p1473_p12, %p1895_p6  ;;  %p1718_p8 = scmp.lt.s32.totalorder %s1709_s16, %s1709_s16 }
  0x1c   : > { %p1700_p0 = pneg %p1474_p13  ;;  %p1719_p9 = por %p1718_p8, %p1717_p4 }
  0x1e   : > { %p1712_p2 = pnand %p1710_p1, %p1700_p0 }
  0x20   : > { %p1713_p3 = pneg %p1712_p2 }
  0x22   : > { %p1720_p7 = pnand %p1719_p9, %p1713_p3 }
  0x24   : > { %1723 = shalt.err (!%p1720_p7)
}
  0x25   : > { %s1797_s17 = smov 128   ;;  %s1798_s18 = smov 8  }
  0x26   : > { %s2054_s1 = sld [smem:[#allocation15_spill]]  ;;  %p1312_p10 = scmp.ge.s32.totalorder %s1794_s27, 6 }
  0x28   : > { %207 = sbr.rel (%p1312_p10) target bundleno = 61 (0x3d), region = 32 }
  0x2c   : > { %1476 = dma.hbm_to_vmem [thread:$0]  (!%p1474_p13), %s2054_s1, 12288, %s189_s15, [#allocation7], %s1797_s17, %s1797_s17, %s1798_s18  }
  0x2d   : > { %s211_s4 = sand.u32 1, %s1774_s22   ;;  %s1457_s30 = smul.u32 12, %s1786_s25 }
  0x2e   : > { %s1456_s6 = smul.u32 192, %s211_s4  ;;  %s1799_s11 = smov 4608  }
  0x2f   : > { %s1458_s10 = smul.u32 72, %s1790_s26  ;;  %1463 = sst [smem:[#allocation9]] (%p1891_p5), %s1799_s11 }
  0x30   : > { %s215_s15 = scalar_lea.vmem [#allocation4], %s1456_s6  ;;  %s1800_s18 = smov 1536  }
  0x31   : > { %s223_s14 = sadd.s32 %s1458_s10, %s1457_s30  ;;  %s238_s16 = sshll.u32 %s215_s15, 4  ;;  %s239_s16 = int_to_ptr.vmem [resolvable:$true] %s238_s16 }
  0x32   : > { %s1462_s17 = scalar_select %p1891_p5, [#allocation0], [#allocation10] }
  0x33   : > { %1464 = sst [smem:[#allocation9 + $0x1]] (%p1891_p5), %s1800_s18  ;;  %s1801_s20 = smov 2  }
  0x34   : > { %s230_s19 = sld [smem:[%s1462_s17]]   ;;  %s1317_s1 = sshll.u32 %s223_s14, 7 }
  0x35   : > { %1465 = sst [smem:[#allocation9 + $0x2]] (%p1891_p5), %s1801_s20  ;;  %s1802_s29 = smov 768  }
  0x36   : > { %1466 = sst [smem:[#allocation9 + $0x3]] (%p1891_p5), %s1802_s29  ;;  %s1803_s30 = smov 48  }
  0x37   : > { %1467 = sst [smem:[#allocation9 + $0x4]] (%p1891_p5), %s1802_s29  ;;  %s225_s11 = scalar_lea.hbm %s2038_s0, %s1317_s1 }
  0x38   : > { %1468 = sst [smem:[#allocation9 + $0x5]] (%p1891_p5), %s1803_s30  ;;  %s212_s17 = scalar_lea.sflag [#allocation5], %s211_s4 }
  0x39   : > { %s1804_s28 = smov 131072  }
  0x3a   : > { %s1318_s15 = sshll.u32 %s230_s19, 26 }
  0x3b   : > { %s1319_s18 = sadd.s32 134217728, %s1318_s15 }
  0x3c   : > { %1469 = dma.general (%p1891_p5), %s225_s11, 3072, %s239_s16, %s212_s17, %s1804_s28, [#allocation9], %s1319_s18, 0  }
  0x3d PF: > { %263 = sbr.rel (%p1911_p11) target bundleno = 591 (0x24f), region = 40  ;;  %s265_s29 = sand.u32 (!%p1911_p11), 1, %s1770_s21  }
  0x3e   : > { %s1459_s14 = smul.u32 (!%p1911_p11), 192, %s265_s29  ;;  %s266_s20 = scalar_lea.sflag (!%p1911_p11), [#allocation5], %s265_s29 }
  0x3f   : > { %p2055_p7 = scmp.ne.s32.totalorder (!%p1911_p11), %s2052_s9, 0 }
  0x40   : > { %s1951_s30 = scalar_lea.vmem (!%p1911_p11), [#allocation4], %s1459_s14 }
  0x42   : > { %1757 = dma.done.wait (%p2055_p7), %s266_s20, 3072  }
  0x43   : > { %1759 = vsyncadd (%p2055_p7), %s266_s20, 4294964224 }
  0x44   : > { %1761 = dma.done.wait (%p1895_p6), [#allocation7], 12288  }
  0x45   : > { %1763 = vsyncadd (%p1895_p6), [#allocation7], 4294955008  ;;  %s1322_s1 = sshll.u32 %s1782_s24, 1  ;;  %p1323_p11 = scmp.ne.s32.totalorder %s1778_s23, 0 }
  0x46   : > { %p302_p5 = scmp.lt.s32.totalorder %s1322_s1, 3 }
  0x47   : > { %309 = sbr.rel (%p1323_p11) target bundleno = 79 (0x4f), region = 52 }
  0x48   : > { %s2072_s1 = smov (!%p302_p5, %s1322_s1), 3 }
  0x49   : > { %s1965_s12 = scalar_lea.vmem %s2043_s5, %s2072_s1 }
  0x4c   : > { %v1805_v1 = vmov 0.0  }
  0x4d   : > { %310 = vst [vmem:[#allocation2 + $0x10] sm:$0xff] %v1805_v1  ;;  %311 = vst [vmem:[#allocation2] sm:$0xff] %v1805_v1 }
  0x4e   : > { %312 = vst [vmem:[#allocation2 + $0x18] sm:$0xff] %v1805_v1  ;;  %313 = vst [vmem:[#allocation2 + $0x8] sm:$0xff] %v1805_v1 }
  0x4f PF: > { %v1554_v2 = vld [vmem:[#allocation6 + $0x74] ss:$8 sps:$4 sm:$0xff]   ;;  %v1558_v4 = vld [vmem:[#allocation6 + $0x70] ss:$8 sps:$4 sm:$0xff]   ;;  %v1560_v6 = vld [vmem:[#allocation6 + $0x64] ss:$8 sps:$4 sm:$0xff]  }
  0x50   : > { %v1556_v3 = vld [vmem:[#allocation6 + $0x174] ss:$8 sps:$4 sm:$0xff]   ;;  %938 = vmatprep.subr.bf16.mxu0 %v1554_v2  ;;  %v1559_v5 = vld [vmem:[#allocation6 + $0x170] ss:$8 sps:$4 sm:$0xff]   ;;  %v1562_v7 = vld [vmem:[#allocation6 + $0x164] ss:$8 sps:$4 sm:$0xff]  }
  0x51   : > { %991 = vmatprep.subr.bf16.mxu1 %v1556_v3  ;;  %939 = vmatpush1.bf16.msra.mxu0 %v1558_v4  ;;  %v1564_v8 = vld [vmem:[#allocation6 + $0x60] ss:$8 sps:$4 sm:$0xff]   ;;  %v1566_v10 = vld [vmem:[#allocation6 + $0x54] ss:$8 sps:$4 sm:$0xff]   ;;  %v1570_v12 = vld [vmem:[#allocation6 + $0x50] ss:$8 sps:$4 sm:$0xff]  }
  0x52   : > { %992 = vmatpush1.bf16.msra.mxu1 %v1559_v5  ;;  %940 = vmatprep.subr.bf16.mxu0 %v1560_v6  ;;  %v1565_v9 = vld [vmem:[#allocation6 + $0x160] ss:$8 sps:$4 sm:$0xff]   ;;  %v1568_v11 = vld [vmem:[#allocation6 + $0x154] ss:$8 sps:$4 sm:$0xff]   ;;  %v1571_v13 = vld [vmem:[#allocation6 + $0x150] ss:$8 sps:$4 sm:$0xff]  }
  0x53   : > { %993 = vmatprep.subr.bf16.mxu1 %v1562_v7  ;;  %v1572_v14 = vld [vmem:[#allocation6 + $0x44] ss:$8 sps:$4 sm:$0xff]   ;;  %v1576_v16 = vld [vmem:[#allocation6 + $0x40] ss:$8 sps:$4 sm:$0xff]   ;;  %v1578_v18 = vld [vmem:[#allocation6 + $0x34] ss:$8 sps:$4 sm:$0xff]  }
  0x54   : > { %v1574_v15 = vld [vmem:[#allocation6 + $0x144] ss:$8 sps:$4 sm:$0xff]   ;;  %v1577_v17 = vld [vmem:[#allocation6 + $0x140] ss:$8 sps:$4 sm:$0xff]   ;;  %v1580_v19 = vld [vmem:[#allocation6 + $0x134] ss:$8 sps:$4 sm:$0xff]  }
  0x55   : > { %941 = vmatpush1.bf16.msra.mxu0 %v1564_v8  ;;  %v1582_v20 = vld [vmem:[#allocation6 + $0x30] ss:$8 sps:$4 sm:$0xff]   ;;  %v1584_v22 = vld [vmem:[#allocation6 + $0x24] ss:$8 sps:$4 sm:$0xff]   ;;  %v1588_v24 = vld [vmem:[#allocation6 + $0x20] ss:$8 sps:$4 sm:$0xff]  }
  0x56   : > { %994 = vmatpush1.bf16.msra.mxu1 %v1565_v9  ;;  %942 = vmatprep.subr.bf16.mxu0 %v1566_v10  ;;  %v1583_v21 = vld [vmem:[#allocation6 + $0x130] ss:$8 sps:$4 sm:$0xff]   ;;  %v1586_v23 = vld [vmem:[#allocation6 + $0x124] ss:$8 sps:$4 sm:$0xff]   ;;  %v1589_v25 = vld [vmem:[#allocation6 + $0x120] ss:$8 sps:$4 sm:$0xff]  }
  0x57   : > { %995 = vmatprep.subr.bf16.mxu1 %v1568_v11  ;;  %v1590_v26 = vld [vmem:[#allocation6 + $0x14] ss:$8 sps:$4 sm:$0xff]   ;;  %v1594_v28 = vld [vmem:[#allocation6 + $0x10] ss:$8 sps:$4 sm:$0xff]   ;;  %v1596_v30 = vld [vmem:[#allocation6 + $0x4] ss:$8 sps:$4 sm:$0xff]  }
  0x58   : > { %v1592_v27 = vld [vmem:[#allocation6 + $0x114] ss:$8 sps:$4 sm:$0xff]   ;;  %v1595_v29 = vld [vmem:[#allocation6 + $0x110] ss:$8 sps:$4 sm:$0xff]   ;;  %v1598_v31 = vld [vmem:[#allocation6 + $0x104] ss:$8 sps:$4 sm:$0xff]  }
  0x59   : > { %943 = vmatpush1.bf16.msra.mxu0 %v1570_v12  ;;  %v1600_v32 = vld [vmem:[#allocation6] ss:$8 sps:$4 sm:$0xff]   ;;  %v1602_v34 = vld [vmem:[#allocation6 + $0xf4] ss:$8 sps:$4 sm:$0xff]   ;;  %v1606_v36 = vld [vmem:[#allocation6 + $0xf0] ss:$8 sps:$4 sm:$0xff]  }
  0x5a   : > { %996 = vmatpush1.bf16.msra.mxu1 %v1571_v13  ;;  %944 = vmatprep.subr.bf16.mxu0 %v1572_v14  ;;  %v1601_v33 = vld [vmem:[#allocation6 + $0x100] ss:$8 sps:$4 sm:$0xff]   ;;  %v1604_v35 = vld [vmem:[#allocation6 + $0x1f4] ss:$8 sps:$4 sm:$0xff]   ;;  %v1607_v37 = vld [vmem:[#allocation6 + $0x1f0] ss:$8 sps:$4 sm:$0xff]  }
  0x5b   : > { %997 = vmatprep.subr.bf16.mxu1 %v1574_v15  ;;  %v1608_v38 = vld [vmem:[#allocation6 + $0xe4] ss:$8 sps:$4 sm:$0xff]   ;;  %v1612_v40 = vld [vmem:[#allocation6 + $0xe0] ss:$8 sps:$4 sm:$0xff]   ;;  %v1614_v42 = vld [vmem:[#allocation6 + $0xd4] ss:$8 sps:$4 sm:$0xff]  }
  0x5c   : > { %v1610_v39 = vld [vmem:[#allocation6 + $0x1e4] ss:$8 sps:$4 sm:$0xff]   ;;  %v1613_v41 = vld [vmem:[#allocation6 + $0x1e0] ss:$8 sps:$4 sm:$0xff]   ;;  %v1616_v43 = vld [vmem:[#allocation6 + $0x1d4] ss:$8 sps:$4 sm:$0xff]  }
  0x5d   : > { %945 = vmatpush1.bf16.msra.mxu0 %v1576_v16  ;;  %v1618_v44 = vld [vmem:[#allocation6 + $0xd0] ss:$8 sps:$4 sm:$0xff]   ;;  %v1620_v46 = vld [vmem:[#allocation6 + $0xc4] ss:$8 sps:$4 sm:$0xff]   ;;  %v1624_v52 = vld [vmem:[#allocation6 + $0xc0] ss:$8 sps:$4 sm:$0xff]  }
  0x5e   : > { %998 = vmatpush1.bf16.msra.mxu1 %v1577_v17  ;;  %946 = vmatprep.subr.bf16.mxu0 %v1578_v18  ;;  %v1619_v45 = vld [vmem:[#allocation6 + $0x1d0] ss:$8 sps:$4 sm:$0xff]   ;;  %v1622_v47 = vld [vmem:[#allocation6 + $0x1c4] ss:$8 sps:$4 sm:$0xff]   ;;  %v1625_v53 = vld [vmem:[#allocation6 + $0x1c0] ss:$8 sps:$4 sm:$0xff]  }
  0x5f   : > { %999 = vmatprep.subr.bf16.mxu1 %v1580_v19  ;;  %v315_v48 = vld [vmem:[%s1951_s30 + $0x8] sm:$0xff]  ;;  %v321_v49 = vld [vmem:[%s1951_s30 + $0x38] sm:$0xff]  ;;  %v314_v8 = vld [vmem:[%s1951_s30] sm:$0xff]  ;;  %p1420_p6 = scmp.ne.s32.totalorder %s1778_s23, 2 }
  0x60   : > { %v317_v50 = vld [vmem:[%s1951_s30 + $0x18] sm:$0xff]  ;;  %v323_v51 = vld [vmem:[%s1951_s30 + $0x48] sm:$0xff]  ;;  %v339_v55 = vpack.c.bf16 %v321_v49, %v315_v48  ;;  %v320_v9 = vld [vmem:[%s1951_s30 + $0x30] sm:$0xff] }
  0x61   : > { %947 = vmatpush1.bf16.msra.mxu0 %v1582_v20  ;;  %v1626_v54 = vld [vmem:[#allocation6 + $0xb4] ss:$8 sps:$4 sm:$0xff]   ;;  %v341_v56 = vpack.c.bf16 %v323_v51, %v317_v50  ;;  %v1630_v58 = vld [vmem:[#allocation6 + $0xb0] ss:$8 sps:$4 sm:$0xff]   ;;  %v1632_v60 = vld [vmem:[#allocation6 + $0xa4] ss:$8 sps:$4 sm:$0xff]   ;;  %v338_v13 = vpack.c.bf16 %v320_v9, %v314_v8 }
  0x62   : > { %1000 = vmatpush1.bf16.msra.mxu1 %v1583_v21  ;;  %948 = vmatprep.subr.bf16.mxu0 %v1584_v22  ;;  %v1628_v57 = vld [vmem:[#allocation6 + $0x1b4] ss:$8 sps:$4 sm:$0xff]   ;;  %v1631_v59 = vld [vmem:[#allocation6 + $0x1b0] ss:$8 sps:$4 sm:$0xff]   ;;  %v1634_v61 = vld [vmem:[#allocation6 + $0x1a4] ss:$8 sps:$4 sm:$0xff]  }
  0x63   : > { %1001 = vmatprep.subr.bf16.mxu1 %v1586_v23  ;;  %970 = vmatprep.mubr.bf16.mxu0 %v339_v55  ;;  %v1636_v62 = vld [vmem:[#allocation6 + $0xa0] ss:$8 sps:$4 sm:$0xff]   ;;  %v1638_v0 = vld [vmem:[#allocation6 + $0x94] ss:$8 sps:$4 sm:$0xff]   ;;  %v1642_v2 = vld [vmem:[#allocation6 + $0x90] ss:$8 sps:$4 sm:$0xff]  }
  0x64   : > { %1023 = vmatprep.mubr.bf16.mxu1 %v341_v56  ;;  %v1637_v63 = vld [vmem:[#allocation6 + $0x1a0] ss:$8 sps:$4 sm:$0xff]   ;;  %v1640_v1 = vld [vmem:[#allocation6 + $0x194] ss:$8 sps:$4 sm:$0xff]   ;;  %v1643_v3 = vld [vmem:[#allocation6 + $0x190] ss:$8 sps:$4 sm:$0xff]  }
  0x65   : > { %949 = vmatpush1.bf16.msra.mxu0 %v1588_v24  ;;  %v1644_v4 = vld [vmem:[#allocation6 + $0x84] ss:$8 sps:$4 sm:$0xff]   ;;  %v1648_v6 = vld [vmem:[#allocation6 + $0x80] ss:$8 sps:$4 sm:$0xff]   ;;  %v316_v10 = vld [vmem:[%s1951_s30 + $0x10] sm:$0xff] }
  0x66   : > { %1002 = vmatpush1.bf16.msra.mxu1 %v1589_v25  ;;  %950 = vmatprep.subr.bf16.mxu0 %v1590_v26  ;;  %v1646_v5 = vld [vmem:[#allocation6 + $0x184] ss:$8 sps:$4 sm:$0xff]   ;;  %v1649_v7 = vld [vmem:[#allocation6 + $0x180] ss:$8 sps:$4 sm:$0xff]   ;;  %v1652_v12 = vld [vmem:[#allocation6 + $0x274] ss:$8 sps:$4 sm:$0xff]  }
  0x67   : > { %1003 = vmatprep.subr.bf16.mxu1 %v1592_v27  ;;  %v322_v11 = vld [vmem:[%s1951_s30 + $0x40] sm:$0xff]  ;;  %v327_v15 = vld [vmem:[%s1951_s30 + $0x68] sm:$0xff]  ;;  %v333_v16 = vld [vmem:[%s1951_s30 + $0x98] sm:$0xff] }
  0x68   : > { %v340_v14 = vpack.c.bf16 %v322_v11, %v316_v10  ;;  %v1650_v17 = vld [vmem:[#allocation6 + $0x270] ss:$8 sps:$4 sm:$0xff]   ;;  %v335_v19 = vld [vmem:[%s1951_s30 + $0xa8] sm:$0xff]  ;;  %v345_v22 = vpack.c.bf16 %v333_v16, %v327_v15  ;;  %v326_v23 = vld [vmem:[%s1951_s30 + $0x60] sm:$0xff]  ;;  %v448_v10 = vlaneseq }
  0x69   : > { %951 = vmatpush1.bf16.msra.mxu0 %v1594_v28  ;;  %v329_v18 = vld [vmem:[%s1951_s30 + $0x78] sm:$0xff]  ;;  %v1655_v20 = vld [vmem:[#allocation6 + $0x264] ss:$8 sps:$4 sm:$0xff]   ;;  %v1653_v21 = vld [vmem:[#allocation6 + $0x260] ss:$8 sps:$4 sm:$0xff]  }
  0x6a   : > { %1004 = vmatpush1.bf16.msra.mxu1 %v1595_v29  ;;  %952 = vmatprep.subr.bf16.mxu0 %v1596_v30  ;;  %v347_v24 = vpack.c.bf16 %v335_v19, %v329_v18  ;;  %v332_v25 = vld [vmem:[%s1951_s30 + $0x90] sm:$0xff]  ;;  %v334_v27 = vld [vmem:[%s1951_s30 + $0xa0] sm:$0xff]  ;;  %v319_v29 = vld [vmem:[%s1951_s30 + $0x28] sm:$0xff] }
  0x6b   : > { %1005 = vmatprep.subr.bf16.mxu1 %v1598_v31  ;;  %v328_v26 = vld [vmem:[%s1951_s30 + $0x70] sm:$0xff]  ;;  %v344_v30 = vpack.c.bf16 %v332_v25, %v326_v23  ;;  %v1679_v50 = vld [vmem:[#allocation6 + $0x2e4] ss:$8 sps:$4 sm:$0xff]   ;;  %v1677_v51 = vld [vmem:[#allocation6 + $0x2e0] ss:$8 sps:$4 sm:$0xff]  }
  0x6c   : > { %v1658_v28 = vld [vmem:[#allocation6 + $0x254] ss:$8 sps:$4 sm:$0xff]   ;;  %v346_v31 = vpack.c.bf16 %v334_v27, %v328_v26  ;;  %v1674_v49 = vld [vmem:[#allocation6 + $0x2f0] ss:$8 sps:$4 sm:$0xff]   ;;  %v1683_v55 = vld [vmem:[#allocation6 + $0x2c0] ss:$8 sps:$4 sm:$0xff]  }
  0x6d   : > { %953 = vmatpush1.bf16.msra.mxu0 %v1600_v32  ;;  %v325_v32 = vld [vmem:[%s1951_s30 + $0x58] sm:$0xff] }
  0x6e   : > { %1006 = vmatpush1.bf16.msra.mxu1 %v1601_v33  ;;  %954 = vmatprep.subr.bf16.mxu0 %v1602_v34  ;;  %v331_v33 = vld [vmem:[%s1951_s30 + $0x88] sm:$0xff]  ;;  %v337_v34 = vld [vmem:[%s1951_s30 + $0xb8] sm:$0xff] }
  0x6f   : > { %1007 = vmatprep.subr.bf16.mxu1 %v1604_v35  ;;  %v1656_v35 = vld [vmem:[#allocation6 + $0x250] ss:$8 sps:$4 sm:$0xff]   ;;  %v1676_v48 = vld [vmem:[#allocation6 + $0x2f4] ss:$8 sps:$4 sm:$0xff]  }
  0x70   : > { %v1688_v56 = vld [vmem:[#allocation6 + $0x2b4] ss:$8 sps:$4 sm:$0xff]  }
  0x71   : > { %955 = vmatpush2.bf16.msra.mxu0 %v1606_v36  ;;  %v1661_v36 = vld [vmem:[#allocation6 + $0x244] ss:$8 sps:$4 sm:$0xff]   ;;  %v446_v19 = vld [vmem:[%s2040_s2] sm:$0x3] }
  0x72   : > { %1008 = vmatpush2.bf16.msra.mxu1 %v1607_v37  ;;  %956 = vmatprep.subr.bf16.mxu0 %v1608_v38  ;;  %v343_v37 = vpack.c.bf16 %v325_v32, %v319_v29  ;;  %v349_v38 = vpack.c.bf16 %v337_v34, %v331_v33 }
  0x73   : > { %1009 = vmatprep.subr.bf16.mxu1 %v1610_v39  ;;  %v1659_v39 = vld [vmem:[#allocation6 + $0x240] ss:$8 sps:$4 sm:$0xff]  }
  0x75   : > { %957 = vmatpush2.bf16.msra.mxu0 %v1612_v40  ;;  %v1664_v40 = vld [vmem:[#allocation6 + $0x234] ss:$8 sps:$4 sm:$0xff]  }
  0x76   : > { %1010 = vmatpush2.bf16.msra.mxu1 %v1613_v41  ;;  %958 = vmatprep.subr.bf16.mxu0 %v1614_v42  ;;  %v1662_v41 = vld [vmem:[#allocation6 + $0x230] ss:$8 sps:$4 sm:$0xff]   ;;  %v1667_v42 = vld [vmem:[#allocation6 + $0x224] ss:$8 sps:$4 sm:$0xff]  }
  0x77   : > { %1011 = vmatprep.subr.bf16.mxu1 %v1616_v43  ;;  %v1665_v43 = vld [vmem:[#allocation6 + $0x220] ss:$8 sps:$4 sm:$0xff]  }
  0x79   : > { %959 = vmatpush2.bf16.msra.mxu0 %v1618_v44  ;;  %v1670_v44 = vld [vmem:[#allocation6 + $0x214] ss:$8 sps:$4 sm:$0xff]  }
  0x7a   : > { %1012 = vmatpush2.bf16.msra.mxu1 %v1619_v45  ;;  %960 = vmatprep.subr.bf16.mxu0 %v1620_v46  ;;  %v1668_v45 = vld [vmem:[#allocation6 + $0x210] ss:$8 sps:$4 sm:$0xff]   ;;  %v1673_v46 = vld [vmem:[#allocation6 + $0x204] ss:$8 sps:$4 sm:$0xff]  }
  0x7b   : > { %1013 = vmatprep.subr.bf16.mxu1 %v1622_v47  ;;  %v1671_v47 = vld [vmem:[#allocation6 + $0x200] ss:$8 sps:$4 sm:$0xff]  }
  0x7d   : > { %961 = vmatpush2.bf16.msra.mxu0 %v1624_v52  ;;  %v1682_v52 = vld [vmem:[#allocation6 + $0x2d4] ss:$8 sps:$4 sm:$0xff]  }
  0x7e   : > { %1014 = vmatpush2.bf16.msra.mxu1 %v1625_v53  ;;  %962 = vmatprep.subr.bf16.mxu0 %v1626_v54  ;;  %v1680_v53 = vld [vmem:[#allocation6 + $0x2d0] ss:$8 sps:$4 sm:$0xff]   ;;  %v1685_v54 = vld [vmem:[#allocation6 + $0x2c4] ss:$8 sps:$4 sm:$0xff]  }
  0x7f   : > { %1015 = vmatprep.subr.bf16.mxu1 %v1628_v57  ;;  %v1686_v57 = vld [vmem:[#allocation6 + $0x2b0] ss:$8 sps:$4 sm:$0xff]  }
  0x81   : > { %963 = vmatpush2.bf16.msra.mxu0 %v1630_v58  ;;  %v1691_v58 = vld [vmem:[#allocation6 + $0x2a4] ss:$8 sps:$4 sm:$0xff]  }
  0x82   : > { %1016 = vmatpush2.bf16.msra.mxu1 %v1631_v59  ;;  %964 = vmatprep.subr.bf16.mxu0 %v1632_v60  ;;  %v1689_v59 = vld [vmem:[#allocation6 + $0x2a0] ss:$8 sps:$4 sm:$0xff]   ;;  %v1694_v60 = vld [vmem:[#allocation6 + $0x294] ss:$8 sps:$4 sm:$0xff]  }
  0x83   : > { %1017 = vmatprep.subr.bf16.mxu1 %v1634_v61  ;;  %v1692_v61 = vld [vmem:[#allocation6 + $0x290] ss:$8 sps:$4 sm:$0xff]  }
  0x85   : > { %965 = vmatpush2.bf16.msra.mxu0 %v1636_v62  ;;  %v1697_v62 = vld [vmem:[#allocation6 + $0x284] ss:$8 sps:$4 sm:$0xff]  }
  0x86   : > { %1018 = vmatpush2.bf16.msra.mxu1 %v1637_v63  ;;  %966 = vmatprep.subr.bf16.mxu0 %v1638_v0  ;;  %v1695_v63 = vld [vmem:[#allocation6 + $0x280] ss:$8 sps:$4 sm:$0xff]  }
  0x87   : > { %1019 = vmatprep.subr.bf16.mxu1 %v1640_v1  ;;  %v318_v0 = vld [vmem:[%s1951_s30 + $0x20] sm:$0xff]  ;;  %v324_v1 = vld [vmem:[%s1951_s30 + $0x50] sm:$0xff] }
  0x89   : > { %967 = vmatpush2.bf16.msra.mxu0 %v1642_v2  ;;  %v330_v2 = vld [vmem:[%s1951_s30 + $0x80] sm:$0xff] }
  0x8a   : > { %1020 = vmatpush2.bf16.msra.mxu1 %v1643_v3  ;;  %968 = vmatprep.subr.bf16.mxu0 %v1644_v4  ;;  %v336_v3 = vld [vmem:[%s1951_s30 + $0xb0] sm:$0xff]  ;;  %v342_v4 = vpack.c.bf16 %v324_v1, %v318_v0 }
  0x8b   : > { %1021 = vmatprep.subr.bf16.mxu1 %v1646_v5  ;;  %v348_v5 = vpack.c.bf16 %v336_v3, %v330_v2  ;;  %v1105_v3 = vld [vmem:[#allocation2 + $0x10] sm:$0xff] }
  0x8d   : > { %969 = vmatpush2.bf16.msra.mxu0 %v1648_v6 }
  0x8e   : > { %1022 = vmatpush2.bf16.msra.mxu1 %v1649_v7  ;;  %1044 = vmatprep.subr.bf16.mxu0 %v1652_v12 }
  0x8f   : > { %1424 = vmatprep.subr.bf16.mxu1 %v1652_v12 }
  0x90   : > { %971 = vmatmul.mubr.bf16.vlgmr.msra.gmra.mxu0 %v338_v13  ;;  %v1992_v13 = vshrl.u32 %v448_v10, 7  ;;  %v1108_v10 = vld [vmem:[#allocation2 + $0x8] sm:$0xff] }
  0x91   : > { %1024 = vmatmul.mubr.bf16.vlgmr.msra.gmra.mxu1 %v340_v14  ;;  %1045 = vmatpush1.bf16.msra.mxu0 %v1650_v17 }
  0x92   : > { %1440 = vmatpush1.bf16.msra.mxu1 %v1650_v17  ;;  %1046 = vmatprep.subr.bf16.mxu0 %v1655_v20  ;;  %v450_v18 = vsub.s32 0, %v1992_v13 }
  0x93   : > { %1425 = vmatprep.subr.bf16.mxu1 %v1655_v20  ;;  %980 = vmatprep.mubr.bf16.mxu0 %v345_v22  ;;  %v454_v20 = vsub.s32 1, %v1992_v13 }
  0x94   : > { %1033 = vmatprep.mubr.bf16.mxu1 %v347_v24  ;;  %v451_v23 = vrot.slane %v446_v19, %v450_v18 }
  0x95   : > { %1047 = vmatpush1.bf16.msra.mxu0 %v1653_v21  ;;  %v455_v24 = vrot.slane %v446_v19, %v454_v20 }
  0x96   : > { %1441 = vmatpush1.bf16.msra.mxu1 %v1653_v21  ;;  %1048 = vmatprep.subr.bf16.mxu0 %v1658_v28 }
  0x97   : > { %1426 = vmatprep.subr.bf16.mxu1 %v1658_v28 }
  0x98   : > { %981 = vmatmul.mubr.bf16.gmra.mxu0 %v344_v30 }
  0x99   : > { %1034 = vmatmul.mubr.bf16.gmra.mxu1 %v346_v31  ;;  %1049 = vmatpush1.bf16.msra.mxu0 %v1656_v35 }
  0x9a   : > { %1442 = vmatpush1.bf16.msra.mxu1 %v1656_v35  ;;  %1050 = vmatprep.subr.bf16.mxu0 %v1661_v36 }
  0x9b   : > { %1427 = vmatprep.subr.bf16.mxu1 %v1661_v36  ;;  %1076 = vmatprep.mubr.bf16.mxu0 %v343_v37 }
  0x9c   : > { %1086 = vmatprep.mubr.bf16.mxu1 %v349_v38 }
  0x9d   : > { %1051 = vmatpush1.bf16.msra.mxu0 %v1659_v39 }
  0x9e   : > { %1443 = vmatpush1.bf16.msra.mxu1 %v1659_v39  ;;  %1052 = vmatprep.subr.bf16.mxu0 %v1664_v40 }
  0x9f   : > { %1428 = vmatprep.subr.bf16.mxu1 %v1664_v40 }
  0xa1   : > { %1053 = vmatpush1.bf16.msra.mxu0 %v1662_v41 }
  0xa2   : > { %1444 = vmatpush1.bf16.msra.mxu1 %v1662_v41  ;;  %1054 = vmatprep.subr.bf16.mxu0 %v1667_v42 }
  0xa3   : > { %1429 = vmatprep.subr.bf16.mxu1 %v1667_v42 }
  0xa5   : > { %1055 = vmatpush1.bf16.msra.mxu0 %v1665_v43 }
  0xa6   : > { %1445 = vmatpush1.bf16.msra.mxu1 %v1665_v43  ;;  %1056 = vmatprep.subr.bf16.mxu0 %v1670_v44 }
  0xa7   : > { %1430 = vmatprep.subr.bf16.mxu1 %v1670_v44 }
  0xa9   : > { %1057 = vmatpush1.bf16.msra.mxu0 %v1668_v45 }
  0xaa   : > { %1446 = vmatpush1.bf16.msra.mxu1 %v1668_v45  ;;  %1058 = vmatprep.subr.bf16.mxu0 %v1673_v46 }
  0xab   : > { %1431 = vmatprep.subr.bf16.mxu1 %v1673_v46 }
  0xad   : > { %1059 = vmatpush1.bf16.msra.mxu0 %v1671_v47 }
  0xae   : > { %1447 = vmatpush1.bf16.msra.mxu1 %v1671_v47  ;;  %1060 = vmatprep.subr.bf16.mxu0 %v1676_v48 }
  0xaf   : > { %1432 = vmatprep.subr.bf16.mxu1 %v1676_v48 }
  0xb1   : > { %1061 = vmatpush2.bf16.msra.mxu0 %v1674_v49 }
  0xb2   : > { %1448 = vmatpush2.bf16.msra.mxu1 %v1674_v49  ;;  %1062 = vmatprep.subr.bf16.mxu0 %v1679_v50 }
  0xb3   : > { %1433 = vmatprep.subr.bf16.mxu1 %v1679_v50 }
  0xb5   : > { %1063 = vmatpush2.bf16.msra.mxu0 %v1677_v51 }
  0xb6   : > { %1449 = vmatpush2.bf16.msra.mxu1 %v1677_v51  ;;  %1064 = vmatprep.subr.bf16.mxu0 %v1682_v52 }
  0xb7   : > { %1434 = vmatprep.subr.bf16.mxu1 %v1682_v52 }
  0xb9   : > { %1065 = vmatpush2.bf16.msra.mxu0 %v1680_v53 }
  0xba   : > { %1450 = vmatpush2.bf16.msra.mxu1 %v1680_v53  ;;  %1066 = vmatprep.subr.bf16.mxu0 %v1685_v54 }
  0xbb   : > { %1435 = vmatprep.subr.bf16.mxu1 %v1685_v54 }
  0xbd   : > { %1067 = vmatpush2.bf16.msra.mxu0 %v1683_v55 }
  0xbe   : > { %1451 = vmatpush2.bf16.msra.mxu1 %v1683_v55  ;;  %1068 = vmatprep.subr.bf16.mxu0 %v1688_v56 }
  0xbf   : > { %1436 = vmatprep.subr.bf16.mxu1 %v1688_v56 }
  0xc1   : > { %1069 = vmatpush2.bf16.msra.mxu0 %v1686_v57 }
  0xc2   : > { %1452 = vmatpush2.bf16.msra.mxu1 %v1686_v57  ;;  %1070 = vmatprep.subr.bf16.mxu0 %v1691_v58 }
  0xc3   : > { %1437 = vmatprep.subr.bf16.mxu1 %v1691_v58 }
  0xc5   : > { %1071 = vmatpush2.bf16.msra.mxu0 %v1689_v59 }
  0xc6   : > { %1453 = vmatpush2.bf16.msra.mxu1 %v1689_v59  ;;  %1072 = vmatprep.subr.bf16.mxu0 %v1694_v60 }
  0xc7   : > { %1438 = vmatprep.subr.bf16.mxu1 %v1694_v60 }
  0xc9   : > { %1073 = vmatpush2.bf16.msra.mxu0 %v1692_v61 }
  0xca   : > { %1454 = vmatpush2.bf16.msra.mxu1 %v1692_v61  ;;  %1074 = vmatprep.subr.bf16.mxu0 %v1697_v62 }
  0xcb   : > { %1439 = vmatprep.subr.bf16.mxu1 %v1697_v62 }
  0xcd   : > { %1075 = vmatpush2.bf16.msra.mxu0 %v1695_v63 }
  0xce   : > { %1455 = vmatpush2.bf16.msra.mxu1 %v1695_v63 }
  0xd0   : > { %1077 = vmatmul.mubr.bf16.vlgmr.msra.gmra.mxu0 %v342_v4  ;;  %v1107_v4 = vld [vmem:[#allocation2 + $0x18] sm:$0xff] }
  0xd1   : > { %1087 = vmatmul.mubr.bf16.vlgmr.msra.gmra.mxu1 %v348_v5 }
 0x150   : > { %v972_v6 = vpop.f32.mrf.mxu0 }
 0x151   : > { %v1025_v7 = vpop.f32.mrf.mxu1  ;;  %v973_v27 = vadd.f32 %v972_v6, %v451_v23 }
 0x152   : > { %v974_v8 = vpop.f32.mrf.mxu0 }
 0x153   : > { %v1027_v9 = vpop.f32.mrf.mxu1  ;;  %v975_v29 = vadd.f32 %v974_v8, %v455_v24  ;;  %v1026_v35 = vadd.f32 %v1025_v7, %v973_v27 }
 0x154   : > { %v976_v11 = vpop.f32.mrf.mxu0 }
 0x155   : > { %v1029_v12 = vpop.f32.mrf.mxu1  ;;  %v977_v33 = vadd.f32 %v976_v11, %v451_v23  ;;  %v1028_v41 = vadd.f32 %v1027_v9, %v975_v29  ;;  %v1106_v9 = vld [vmem:[#allocation2] sm:$0xff] }
 0x156   : > { %v978_v14 = vpop.f32.mrf.mxu0 }
 0x157   : > { %v1031_v15 = vpop.f32.mrf.mxu1  ;;  %v979_v39 = vadd.f32 %v978_v14, %v455_v24  ;;  %v1030_v47 = vadd.f32 %v1029_v12, %v977_v33 }
 0x158   : > { %v982_v16 = vpop.f32.mrf.mxu0 }
 0x159   : > { %v1035_v17 = vpop.f32.mrf.mxu1  ;;  %v983_v28 = vadd.f32 %v982_v16, %v451_v23  ;;  %v1032_v53 = vadd.f32 %v1031_v15, %v979_v39 }
 0x15a   : > { %v984_v21 = vpop.f32.mrf.mxu0 }
 0x15b   : > { %v1037_v22 = vpop.f32.mrf.mxu1  ;;  %v985_v30 = vadd.f32 %v984_v21, %v455_v24  ;;  %v1036_v36 = vadd.f32 %v1035_v17, %v983_v28 }
 0x15c   : > { %v986_v25 = vpop.f32.mrf.mxu0 }
 0x15d   : > { %v1039_v26 = vpop.f32.mrf.mxu1  ;;  %v987_v34 = vadd.f32 %v986_v25, %v451_v23  ;;  %v1038_v42 = vadd.f32 %v1037_v22, %v985_v30 }
 0x15e   : > { %v988_v31 = vpop.f32.mrf.mxu0 }
 0x15f   : > { %v1041_v32 = vpop.f32.mrf.mxu1  ;;  %v989_v40 = vadd.f32 %v988_v31, %v455_v24  ;;  %v1040_v48 = vadd.f32 %v1039_v26, %v987_v34 }
 0x161   : > { %v1042_v54 = vadd.f32 %v1041_v32, %v989_v40 }
 0x190   : > { %v1078_v37 = vpop.f32.mrf.mxu0 }
 0x191   : > { %v1088_v38 = vpop.f32.mrf.mxu1  ;;  %v1079_v43 = vadd.f32 %v1078_v37, %v1026_v35 }
 0x192   : > { %v1089_v44 = vadd.f32 %v1088_v38, %v1036_v36  ;;  %v1080_v45 = vpop.f32.mrf.mxu0 }
 0x193   : > { %v1090_v46 = vpop.f32.mrf.mxu1  ;;  %v1081_v49 = vadd.f32 %v1080_v45, %v1028_v41  ;;  %v1097_v57 = vmax.f32 %v1079_v43, 0.0 }
 0x194   : > { %v1091_v50 = vadd.f32 %v1090_v46, %v1038_v42  ;;  %v1082_v51 = vpop.f32.mrf.mxu0  ;;  %v1101_v58 = vmax.f32 %v1089_v44, 0.0 }
 0x195   : > { %v1092_v52 = vpop.f32.mrf.mxu1  ;;  %v1083_v55 = vadd.f32 %v1082_v51, %v1030_v47  ;;  %v1098_v1 = vmax.f32 %v1081_v49, 0.0 }
 0x196   : > { %v1093_v56 = vadd.f32 %v1092_v52, %v1040_v48  ;;  %v1084_v59 = vpop.f32.mrf.mxu0  ;;  %v1102_v2 = vmax.f32 %v1091_v50, 0.0 }
 0x197   : > { %v1094_v60 = vpop.f32.mrf.mxu1  ;;  %v1099_v61 = vmax.f32 %v1083_v55, 0.0  ;;  %v1085_v63 = vadd.f32 %v1084_v59, %v1032_v53 }
 0x198   : > { %v1103_v62 = vmax.f32 %v1093_v56, 0.0  ;;  %v1095_v0 = vadd.f32 %v1094_v60, %v1042_v54 }
 0x199   : > { %v1109_v5 = vadd.f32 %v1099_v61, %v1097_v57  ;;  %v1100_v7 = vmax.f32 %v1085_v63, 0.0 }
 0x19a   : > { %v1111_v6 = vadd.f32 %v1103_v62, %v1101_v58  ;;  %v1104_v8 = vmax.f32 %v1095_v0, 0.0 }
 0x19b   : > { %v1113_v11 = vadd.f32 %v1109_v5, %v1105_v3  ;;  %v1110_v14 = vadd.f32 %v1100_v7, %v1098_v1 }
 0x19c   : > { %v1115_v12 = vadd.f32 %v1111_v6, %v1107_v4  ;;  %v1112_v15 = vadd.f32 %v1104_v8, %v1102_v2  ;;  %1124 = sbr.rel (%p1420_p6) target bundleno = 591 (0x24f), region = 56 }
 0x19d   : > { %1117 = vst [vmem:[#allocation2 + $0x10] sm:$0xff] %v1113_v11  ;;  %v1114_v16 = vadd.f32 %v1110_v14, %v1106_v9 }
 0x19e   : > { %1119 = vst [vmem:[#allocation2 + $0x18] sm:$0xff] %v1115_v12  ;;  %v1116_v17 = vadd.f32 %v1112_v15, %v1108_v10 }
 0x19f   : > { %1118 = vst [vmem:[#allocation2] sm:$0xff] %v1114_v16 }
 0x1a0   : > { %1120 = vst [vmem:[#allocation2 + $0x8] sm:$0xff] %v1116_v17 }
 0x1a1   : > { %v1153_v36 = vld [vmem:[%s2041_s3] sm:$0x3]  ;;  %vm1174_vm0 = vcmask 1041409   ;;  %vm1180_vm1 = vcmask 1041408   ;;  %vm1219_vm2 = vcmask 0  }
 0x1a2   : > { %v1158_v44 = vrot.slane %v1153_v36, %v450_v18  ;;  %v1162_v46 = vrot.slane %v1153_v36, %v454_v20  ;;  %v1806_v20 = vmov 1966171168   ;;  %v1421_v63 = vld [vmem:[#allocation3] ss:$0 sm:$0xff] }
 0x1a3   : > { %v1196_v61 = vunpack.c.l.s4 %v1806_v20 }
 0x1a4   : > { %v1125_v19 = vld [vmem:[#allocation2 + $0x10] sm:$0xff] }
 0x1a5   : > { %v1127_v22 = vld [vmem:[#allocation2 + $0x18] sm:$0xff]  ;;  %v1129_v24 = vrot.slane %v1125_v19, 4  ;;  %v1197_v62 = vunpack.c.0.s8 %v1196_v61 }
 0x1a6   : > { %v1126_v21 = vld [vmem:[#allocation2] sm:$0xff]  ;;  %v1141_v26 = vrot.slane %v1127_v22, 4 }
 0x1a7   : > { %v1128_v23 = vld [vmem:[#allocation2 + $0x8] sm:$0xff]  ;;  %v1135_v25 = vrot.slane %v1126_v21, 4  ;;  %v1130_v28 = vadd.f32 %v1129_v24, %v1125_v19  ;;  %v1200_v0 = vsub.s32 %v1197_v62, %v1992_v13 }
 0x1a8   : > { %v1147_v27 = vrot.slane %v1128_v23, 4  ;;  %v1142_v30 = vadd.f32 %v1141_v26, %v1127_v22 }
 0x1a9   : > { %v1136_v29 = vadd.f32 %v1135_v25, %v1126_v21  ;;  %v1131_v32 = vrot.slane %v1130_v28, 2 }
 0x1aa   : > { %v1148_v31 = vadd.f32 %v1147_v27, %v1128_v23  ;;  %v1143_v34 = vrot.slane %v1142_v30, 2 }
 0x1ab   : > { %v1137_v33 = vrot.slane %v1136_v29, 2  ;;  %v1132_v37 = vadd.f32 %v1131_v32, %v1130_v28 }
 0x1ac   : > { %v1149_v35 = vrot.slane %v1148_v31, 2  ;;  %v1144_v39 = vadd.f32 %v1143_v34, %v1142_v30 }
 0x1ad   : > { %v1138_v38 = vadd.f32 %v1137_v33, %v1136_v29  ;;  %v1133_v41 = vrot.slane %v1132_v37, 1 }
 0x1ae   : > { %v1150_v40 = vadd.f32 %v1149_v35, %v1148_v31  ;;  %v1145_v43 = vrot.slane %v1144_v39, 1 }
 0x1af   : > { %v1139_v42 = vrot.slane %v1138_v38, 1  ;;  %v1134_v47 = vadd.f32 %v1133_v41, %v1132_v37 }
 0x1b0   : > { %v1151_v45 = vrot.slane %v1150_v40, 1  ;;  %v1146_v49 = vadd.f32 %v1145_v43, %v1144_v39 }
 0x1b1   : > { %v1140_v48 = vadd.f32 %v1139_v42, %v1138_v38  ;;  %v1165_v51 = vmul.f32 %v1158_v44, %v1134_v47 }
 0x1b2   : > { %v1152_v50 = vadd.f32 %v1151_v45, %v1150_v40  ;;  %v1167_v52 = vmul.f32 %v1158_v44, %v1146_v49 }
 0x1b3   : > { %v1166_v53 = vmul.f32 %v1162_v46, %v1140_v48 }
 0x1b4   : > { %v1168_v54 = vmul.f32 %v1162_v46, %v1152_v50  ;;  %v1173_v55 = vrot.slane %v1167_v52, 7 }
 0x1b6   : > { %v1176_v56 = vrot.slane %v1168_v54, 7  ;;  %v1175_v57 = vsel %vm1174_vm0, %v1173_v55, %v1165_v51 }
 0x1b7   : > { %v1181_v59 = vsel %vm1180_vm1, %v1175_v57, 0.0 }
 0x1b8   : > { %v1177_v58 = vsel %vm1174_vm0, %v1176_v56, %v1166_v53 }
 0x1b9   : > { %v1182_v18 = vsel %vm1180_vm1, %v1177_v58, 0.0 }
 0x1ba   : > { %v1183_v60 = vadd.f32 %v1182_v18, %v1181_v59 }
 0x1bc   : > { %1184 = vadd.xlane.f32.xlu0 %v1183_v60 }
 0x245   : > { %v1185_v1 = vpop.xlane.xlu0 %1184 }
 0x246   : > { %v1193_v2 = vadd.f32 %v1421_v63, %v1185_v1 }
 0x248   : > { %v1201_v3 = vrot.slane %v1193_v2, %v1200_v0 }
 0x24a   : > { %v1202_v4 = vcombine.high %v1201_v3, %v1201_v3  ;;  %v1209_v5 = vrot.slane %v1201_v3, %v1200_v0 }
 0x24c   : > { %v1216_v6 = vrot.slane %v1202_v4, %v1200_v0  ;;  %1220 = vst.msk [vmem:[%s1965_s12] sm:$0x1] %vm1219_vm2, %v1209_v5 }
 0x24e   : > { %1221 = vst.msk [vmem:[%s1965_s12 + $0x1] sm:$0x1] %vm1219_vm2, %v1216_v6 }
 0x24f PF: > { %s21_s27 = sadd.s32 1, %s1794_s27   ;;  %s2056_s16 = sld [smem:[#allocation13_spill]] }
 0x250   : > { %p18_p12 = scmp.ge.s32.totalorder %s21_s27, 8   ;;  %s2057_s19 = sld [smem:[#allocation14_spill]] }
 0x251   : > { %s2058_s20 = smov %s1770_s21  ;;  %s2059_s21 = smov %s1774_s22 }
 0x252   : > { %s2060_s22 = smov %s1916_s13  ;;  %s2061_s23 = smov %s1786_s25 }
 0x253   : > { %s2062_s24 = smov %s1790_s26  ;;  %20 = sbr.rel (!%p18_p12) target bundleno = 9 (0x9), region = 97 }
 0x255   : > { %s2063_s25 = smov %s2056_s16 }
 0x256   : > { %s2064_s26 = smov %s2057_s19 }
 0x258   :  { %1242 = vsyncpa [#allocation5], 1 }
 0x259   :  { %1244 = vsyncpa [#allocation5 + $0x1], 1 }
 0x25a   :  { %1245 = vsyncpa [#allocation7], 1 }

</bundles_post_ra>
